<compile_context>
chip_gen: v7x
topology: tpu7x:2x2x1
jax: 0.10.0
libtpu: 0.0.40
codegen_flags: <defaults>
</compile_context>

<pallas_src>
import jax
import jax.numpy as jnp
from jax.experimental import pallas as pl
from jax.experimental.pallas import tpu as pltpu


def _round_up(n: int, m: int) -> int:
    return ((n + m - 1) // m) * m


def _mlp_kernel(x_ref, w1_ref, b1_ref, w2_ref, b2_ref, w3_ref, b3_ref, o_ref):
    """3-layer MLP forward on one batch tile; weights resident in VMEM."""
    # In-kernel cast to the compute dtype of the weights (no-op in f32 mode;
    # avoids a wrapper-side HBM pass over x in bf16 mode).
    x = x_ref[...].astype(w1_ref.dtype)

    # Layer 1: Linear + tanh  (f32 MXU accumulate, f32 bias add, f32 tanh)
    h = jnp.dot(x, w1_ref[...], preferred_element_type=jnp.float32) + b1_ref[...]
    h = jnp.tanh(h)

    # Layer 2: Linear + tanh
    h = h.astype(w2_ref.dtype)
    h = jnp.dot(h, w2_ref[...], preferred_element_type=jnp.float32) + b2_ref[...]
    h = jnp.tanh(h)

    # Layer 3: Linear (no activation)
    h = h.astype(w3_ref.dtype)
    out = jnp.dot(h, w3_ref[...], preferred_element_type=jnp.float32) + b3_ref[...]
    o_ref[...] = out.astype(o_ref.dtype)


def prepare_params(params, compute_dtype=jnp.float32):
    """One-time prep: pad last layer to 128 output lanes, cast weights.

    params: list of (W_t, b) with W_t = (in, out) and b = (1, out), float32.
    Returns (kernel_params, out_size) where kernel_params is a flat tuple
    (w1, b1, w2, b2, w3_padded, b3_padded) in their final dtypes/shapes.
    """
    (w1, b1), (w2, b2), (w3, b3) = params
    out_size = w3.shape[1]
    out_pad = max(128, _round_up(out_size, 128))
    if out_pad != out_size:
        w3 = jnp.zeros((w3.shape[0], out_pad), w3.dtype).at[:, :out_size].set(w3)
        b3 = jnp.zeros((1, out_pad), b3.dtype).at[:, :out_size].set(b3)
    w1c, w2c, w3c = (w.astype(compute_dtype) for w in (w1, w2, w3))
    b1f, b2f, b3f = (b.astype(jnp.float32) for b in (b1, b2, b3))
    return (w1c, b1f, w2c, b2f, w3c, b3f), out_size


def _choose_tile_b(B: int, max_tile: int = 4096) -> int:
    """Pick a batch tile: large (amortize step overhead), multiple of 8
    sublanes, and giving an EVEN number of tiles >= 2 when the batch allows
    it (so v7x's two TensorCores both get work)."""
    B8 = _round_up(B, 8)
    if B8 <= 16:                       # tiny batch: single tile
        return B8
    n_tiles = max(2, pl.cdiv(B8, max_tile))
    if n_tiles % 2:
        n_tiles += 1
    return max(8, _round_up(pl.cdiv(B8, n_tiles), 8))


def mlp_forward(x, kernel_params, out_size, *, max_tile_b=4096, slice_output=True):
    """x: (B, input_size) float32.  kernel_params from prepare_params().

    Returns (B, out_size) float32 (or the (B, 128-padded) buffer if
    slice_output=False; only columns [:out_size] are meaningful).
    """
    w1, b1, w2, b2, w3, b3 = kernel_params
    B, in_features = x.shape
    out_pad = w3.shape[1]

    tile_b = _choose_tile_b(B, max_tile_b)
    grid = (pl.cdiv(B, tile_b),)       # ragged last block handled by Pallas

    def _resident(arr):
        # Full-array block, same index every step -> stays resident in VMEM.
        return pl.BlockSpec(arr.shape, lambda i: (0, 0))

    out_padded = pl.pallas_call(
        _mlp_kernel,
        out_shape=jax.ShapeDtypeStruct((B, out_pad), jnp.float32),
        grid_spec=pltpu.PrefetchScalarGridSpec(
            num_scalar_prefetch=0,
            grid=grid,
            in_specs=[
                pl.BlockSpec((tile_b, in_features), lambda i: (i, 0)),
                _resident(w1), _resident(b1),
                _resident(w2), _resident(b2),
                _resident(w3), _resident(b3),
            ],
            out_specs=pl.BlockSpec((tile_b, out_pad), lambda i: (i, 0)),
        ),
        compiler_params=pltpu.CompilerParams(
            dimension_semantics=("parallel",),   # v7x: shard tiles over 2 TCs
            vmem_limit_bytes=32 * 1024 * 1024,   # needed on v5e for big tiles
        ),
    )(x, w1, b1, w2, b2, w3, b3)

    if slice_output:
        return out_padded[:, :out_size]
    return out_padded


def _orthogonal(key, shape, gain):
    """Deterministic orthogonal init (torch.nn.init.orthogonal_ semantics)."""
    rows, cols = shape
    n = max(rows, cols)
    a = jax.random.normal(key, (n, n), dtype=jnp.float32)
    q, r = jnp.linalg.qr(a)
    q = q * jnp.sign(jnp.diagonal(r))
    return gain * q[:rows, :cols]


def make_params(key, input_size, hidden_shape, output_size):
    """Builds params in PyTorch layout, returns (W^T, b) pairs (f32)."""
    sizes = [input_size] + list(hidden_shape) + [output_size]
    gain = jnp.sqrt(2.0)
    params = []
    for idx in range(len(sizes) - 1):
        key, sub = jax.random.split(key)
        fan_in, fan_out = sizes[idx], sizes[idx + 1]
        # torch Linear weight is (out, in); orthogonal_ with gain sqrt(2)
        w_torch = _orthogonal(sub, (fan_out, fan_in), gain)
        b = jnp.zeros((1, fan_out), dtype=jnp.float32)    # bias init = 0, 2D
        params.append((jnp.transpose(w_torch), b))        # kernel wants (in, out)
    return params


def _reference(x, params):
    ref = x
    for li, (w, b) in enumerate(params):
        ref = ref @ w + b
        if li < len(params) - 1:
            ref = jnp.tanh(ref)
    return ref


if __name__ == "__main__":
    # Shapes consistent with the module: MLP(shape=[64, 64], activation_fn=nn.Tanh,
    # input_size=32, output_size=8).
    input_size, hidden, output_size = 32, [64, 64], 8

    key = jax.random.PRNGKey(0)
    key, pkey = jax.random.split(key)
    params = make_params(pkey, input_size, hidden, output_size)

    # One-time parameter prep (pad + cast) -- kept out of the forward path.
    kparams_f32, out_size = prepare_params(params, compute_dtype=jnp.float32)
    kparams_bf16, _ = prepare_params(params, compute_dtype=jnp.bfloat16)

    # --- small-batch case (grid collapses to one tile) ---
    batch_small = 8
    key, xkey = jax.random.split(key)
    x_small = jax.random.normal(xkey, (batch_small, input_size), dtype=jnp.float32)
    out_small = jax.block_until_ready(mlp_forward(x_small, kparams_f32, out_size))
    ref_small = _reference(x_small, params)
    assert out_small.shape == (batch_small, output_size)
    assert jnp.allclose(out_small, ref_small, atol=1e-5, rtol=1e-5)

    # --- larger batch exercising the multi-tile grid (2 even tiles) ---
    batch_large = 1024
    key, xkey = jax.random.split(key)
    x_large = jax.random.normal(xkey, (batch_large, input_size), dtype=jnp.float32)
    out_large = jax.block_until_ready(mlp_forward(x_large, kparams_f32, out_size))
    ref_large = _reference(x_large, params)
    assert out_large.shape == (batch_large, output_size)
    assert jnp.allclose(out_large, ref_large, atol=1e-5, rtol=1e-5)

    # --- ragged batch (not a multiple of the tile): cdiv grid, masked store ---
    batch_ragged = 1000
    key, xkey = jax.random.split(key)
    x_rag = jax.random.normal(xkey, (batch_ragged, input_size), dtype=jnp.float32)
    out_rag = jax.block_until_ready(mlp_forward(x_rag, kparams_f32, out_size))
    ref_rag = _reference(x_rag, params)
    assert out_rag.shape == (batch_ragged, output_size)
    assert jnp.allclose(out_rag, ref_rag, atol=1e-5, rtol=1e-5)

    # --- bf16 compute path (x cast in-kernel; v6e/v7x bandwidth option) ---
    out_bf16 = jax.block_until_ready(mlp_forward(x_large, kparams_bf16, out_size))
    assert out_bf16.shape == (batch_large, output_size)
    assert bool(jnp.all(jnp.isfinite(out_bf16)))
    assert jnp.allclose(out_bf16, ref_large, atol=2e-1, rtol=2e-1)

    print("KERNEL_OK")
</pallas_src>

<mosaic_0001>
module attributes {stable_mosaic.version = 11 : i64} {
  func.func @_mlp_kernel(%arg0: i32, %arg1: memref<8x32xf32, #tpu.memory_space<vmem>>, %arg2: memref<32x64xf32, #tpu.memory_space<vmem>>, %arg3: memref<1x64xf32, #tpu.memory_space<vmem>>, %arg4: memref<64x64xf32, #tpu.memory_space<vmem>>, %arg5: memref<1x64xf32, #tpu.memory_space<vmem>>, %arg6: memref<64x128xf32, #tpu.memory_space<vmem>>, %arg7: memref<1x128xf32, #tpu.memory_space<vmem>>, %arg8: memref<8x128xf32, #tpu.memory_space<vmem>>) attributes {dimension_semantics = [#tpu.dimension_semantics<parallel>], iteration_bounds = array<i64: 1>, scalar_prefetch = 0 : i64, scratch_operands = 0 : i64, tpu.core_type = #tpu.core_type<tc>, window_params = [{transform_indices = @transform_0, window_bounds = array<i64: 8, 32>}, {pipeline_mode = #tpu.pipeline_mode<synchronous>, transform_indices = @transform_1, window_bounds = array<i64: 32, 64>}, {pipeline_mode = #tpu.pipeline_mode<synchronous>, transform_indices = @transform_2, window_bounds = array<i64: 1, 64>}, {pipeline_mode = #tpu.pipeline_mode<synchronous>, transform_indices = @transform_3, window_bounds = array<i64: 64, 64>}, {pipeline_mode = #tpu.pipeline_mode<synchronous>, transform_indices = @transform_4, window_bounds = array<i64: 1, 64>}, {pipeline_mode = #tpu.pipeline_mode<synchronous>, transform_indices = @transform_5, window_bounds = array<i64: 64, 128>}, {pipeline_mode = #tpu.pipeline_mode<synchronous>, transform_indices = @transform_6, window_bounds = array<i64: 1, 128>}, {transform_indices = @transform_7, window_bounds = array<i64: 8, 128>}]} {
    %c0 = arith.constant 0 : index
    %c0_0 = arith.constant 0 : index
    %0 = vector.load %arg1[%c0, %c0_0] : memref<8x32xf32, #tpu.memory_space<vmem>>, vector<8x32xf32>
    %c0_1 = arith.constant 0 : index
    %c0_2 = arith.constant 0 : index
    %1 = vector.load %arg2[%c0_1, %c0_2] : memref<32x64xf32, #tpu.memory_space<vmem>>, vector<32x64xf32>
    %cst = arith.constant dense<0.000000e+00> : vector<8x64xf32>
    %2 = tpu.matmul %0, %1, %cst {dimension_numbers = #tpu.dot_dimension_numbers<[1], [0], [0], [1], [0, 0, 1, 1], [], []>} : vector<8x32xf32>, vector<32x64xf32>, vector<8x64xf32> -> vector<8x64xf32>
    %c0_3 = arith.constant 0 : index
    %c0_4 = arith.constant 0 : index
    %3 = vector.load %arg3[%c0_3, %c0_4] : memref<1x64xf32, #tpu.memory_space<vmem>>, vector<1x64xf32>
    %4 = vector.broadcast %3 : vector<1x64xf32> to vector<8x64xf32>
    %5 = arith.addf %2, %4 : vector<8x64xf32>
    %6 = math.tanh %5 : vector<8x64xf32>
    %c0_5 = arith.constant 0 : index
    %c0_6 = arith.constant 0 : index
    %7 = vector.load %arg4[%c0_5, %c0_6] : memref<64x64xf32, #tpu.memory_space<vmem>>, vector<64x64xf32>
    %cst_7 = arith.constant dense<0.000000e+00> : vector<8x64xf32>
    %8 = tpu.matmul %6, %7, %cst_7 {dimension_numbers = #tpu.dot_dimension_numbers<[1], [0], [0], [1], [0, 0, 1, 1], [], []>} : vector<8x64xf32>, vector<64x64xf32>, vector<8x64xf32> -> vector<8x64xf32>
    %c0_8 = arith.constant 0 : index
    %c0_9 = arith.constant 0 : index
    %9 = vector.load %arg5[%c0_8, %c0_9] : memref<1x64xf32, #tpu.memory_space<vmem>>, vector<1x64xf32>
    %10 = vector.broadcast %9 : vector<1x64xf32> to vector<8x64xf32>
    %11 = arith.addf %8, %10 : vector<8x64xf32>
    %12 = math.tanh %11 : vector<8x64xf32>
    %c0_10 = arith.constant 0 : index
    %c0_11 = arith.constant 0 : index
    %13 = vector.load %arg6[%c0_10, %c0_11] : memref<64x128xf32, #tpu.memory_space<vmem>>, vector<64x128xf32>
    %cst_12 = arith.constant dense<0.000000e+00> : vector<8x128xf32>
    %14 = tpu.matmul %12, %13, %cst_12 {dimension_numbers = #tpu.dot_dimension_numbers<[1], [0], [0], [1], [0, 0, 1, 1], [], []>} : vector<8x64xf32>, vector<64x128xf32>, vector<8x128xf32> -> vector<8x128xf32>
    %c0_13 = arith.constant 0 : index
    %c0_14 = arith.constant 0 : index
    %15 = vector.load %arg7[%c0_13, %c0_14] : memref<1x128xf32, #tpu.memory_space<vmem>>, vector<1x128xf32>
    %16 = vector.broadcast %15 : vector<1x128xf32> to vector<8x128xf32>
    %17 = arith.addf %14, %16 : vector<8x128xf32>
    %c0_15 = arith.constant 0 : index
    %c0_16 = arith.constant 0 : index
    %18 = vector.load %arg8[%c0_15, %c0_16] : memref<8x128xf32, #tpu.memory_space<vmem>>, vector<8x128xf32>
    tpu.vector_store %arg8[%c0_15, %c0_16], %17 {strides = array<i32>} : memref<8x128xf32, #tpu.memory_space<vmem>>, vector<8x128xf32>,
    return
  }
  func.func @transform_0(%arg0: i32) -> (i32, i32) {
    %c0_i32 = arith.constant 0 : i32
    %c0_i32_0 = arith.constant 0 : i32
    return %arg0, %c0_i32 : i32, i32
  }
  func.func @transform_1(%arg0: i32) -> (i32, i32) {
    %c0_i32 = arith.constant 0 : i32
    %c0_i32_0 = arith.constant 0 : i32
    %c0_i32_1 = arith.constant 0 : i32
    return %c0_i32, %c0_i32_0 : i32, i32
  }
  func.func @transform_2(%arg0: i32) -> (i32, i32) {
    %c0_i32 = arith.constant 0 : i32
    %c0_i32_0 = arith.constant 0 : i32
    %c0_i32_1 = arith.constant 0 : i32
    return %c0_i32, %c0_i32_0 : i32, i32
  }
  func.func @transform_3(%arg0: i32) -> (i32, i32) {
    %c0_i32 = arith.constant 0 : i32
    %c0_i32_0 = arith.constant 0 : i32
    %c0_i32_1 = arith.constant 0 : i32
    return %c0_i32, %c0_i32_0 : i32, i32
  }
  func.func @transform_4(%arg0: i32) -> (i32, i32) {
    %c0_i32 = arith.constant 0 : i32
    %c0_i32_0 = arith.constant 0 : i32
    %c0_i32_1 = arith.constant 0 : i32
    return %c0_i32, %c0_i32_0 : i32, i32
  }
  func.func @transform_5(%arg0: i32) -> (i32, i32) {
    %c0_i32 = arith.constant 0 : i32
    %c0_i32_0 = arith.constant 0 : i32
    %c0_i32_1 = arith.constant 0 : i32
    return %c0_i32, %c0_i32_0 : i32, i32
  }
  func.func @transform_6(%arg0: i32) -> (i32, i32) {
    %c0_i32 = arith.constant 0 : i32
    %c0_i32_0 = arith.constant 0 : i32
    %c0_i32_1 = arith.constant 0 : i32
    return %c0_i32, %c0_i32_0 : i32, i32
  }
  func.func @transform_7(%arg0: i32) -> (i32, i32) {
    %c0_i32 = arith.constant 0 : i32
    %c0_i32_0 = arith.constant 0 : i32
    return %arg0, %c0_i32 : i32, i32
  }
}

</mosaic_0001>

<bundles_post_ra>
// kernel: tpu_custom_call.1
= control target key start
LH: loop header
LB: loop body
LE: loop exit
PB: predicated region body
PF: predicated region fallthrough
CT: control target
= control target key end

     0   :  { %12 = vsyncpa [#allocation3], 0  ;;  %s746_s0 = inlined_call_operand.hbm [shape: f32[8,32], index: 0, kind: input, shape index: {}]   ;;  %s747_s1 = inlined_call_operand.hbm [shape: f32[32,64], index: 1, kind: input, shape index: {}]   ;;  %s748_s2 = inlined_call_operand.vmem [shape: f32[1,64], index: 2, kind: input, shape index: {}]   ;;  %s749_s3 = inlined_call_operand.hbm [shape: f32[64,64], index: 3, kind: input, shape index: {}]   ;;  %s750_s4 = inlined_call_operand.vmem [shape: f32[1,64], index: 4, kind: input, shape index: {}]   ;;  %s751_s5 = inlined_call_operand.hbm [shape: f32[64,128], index: 5, kind: input, shape index: {}]   ;;  %s752_s6 = inlined_call_operand.vmem [shape: f32[1,128], index: 6, kind: input, shape index: {}]   ;;  %s753_s7 = inlined_call_operand.hbm [shape: f32[8,128], index: 7, kind: output, shape index: {}]  }
   0x1   :  { %13 = vsyncpa [#allocation6], 0 }
   0x2   :  { %14 = vsyncpa [#allocation9], 0 }
   0x3   :  { %15 = vsyncpa [#allocation4], 0  ;;  %s603_s24 = smov [#allocation5]   ;;  %s485_s28 = scalar_lea.hbm %s747_s1, 512 }
   0x4   :  { %s31_s25 = sshll.u32 %s603_s24, 4  ;;  %p486_p0 = scmp.ne.s32.totalorder %s747_s1, %s485_s28  ;;  %s32_s25 = int_to_ptr.vmem [resolvable:$true] %s31_s25 }
   0x5   :  { %p489_p1 = scmp.lt.u32.totalorder %s485_s28, %s747_s1 }
   0x7   :  { %p491_p2 = pnand %p489_p1, %p486_p0 }
   0x9   :  { %494 = shalt.err (!%p491_p2)
}
   0xa   :  { %s495_s10 = scalar_lea.vmem %s32_s25, 512  ;;  %p500_p4 = scmp.lt.s32.totalorder %s32_s25, %s32_s25 }
   0xb   :  { %p496_p3 = scmp.ne.s32.totalorder %s32_s25, %s495_s10  ;;  %p501_p5 = scmp.lt.s32.totalorder %s495_s10, %s495_s10 }
   0xd   :  { %p502_p6 = por %p501_p5, %p500_p4 }
   0xf   :  { %p503_p7 = pnand %p502_p6, %p496_p3 }
  0x11   :  { %506 = shalt.err (!%p503_p7)
}
  0x12   :  { %s604_s11 = smov 128   ;;  %s605_s12 = smov 8  }
  0x13   :  { %37 = dma.hbm_to_vmem [thread:$0]  %s747_s1, 512, %s32_s25, [#allocation6], %s604_s11, %s604_s11, %s605_s12  }
  0x14   :  { %s606_s15 = smov [#allocation2]   ;;  %s607_s17 = smov [#allocation7]  }
  0x15   :  { %s22_s16 = sshll.u32 %s606_s15, 4  ;;  %s45_s18 = sshll.u32 %s607_s17, 4  ;;  %s23_s16 = int_to_ptr.vmem [resolvable:$true] %s22_s16  ;;  %s46_s18 = int_to_ptr.vmem [resolvable:$true] %s45_s18 }
  0x16   :  { %s507_s21 = scalar_lea.hbm %s746_s0, 128 }
  0x17   :  { %p508_p8 = scmp.ne.s32.totalorder %s746_s0, %s507_s21  ;;  %p511_p9 = scmp.lt.u32.totalorder %s507_s21, %s746_s0 }
  0x19   :  { %p513_p10 = pnand %p511_p9, %p508_p8 }
  0x1b   :  { %516 = shalt.err (!%p513_p10)
}
  0x1c   :  { %s517_s1 = scalar_lea.vmem %s23_s16, 128  ;;  %p522_p12 = scmp.lt.s32.totalorder %s23_s16, %s23_s16 }
  0x1d   :  { %p518_p11 = scmp.ne.s32.totalorder %s23_s16, %s517_s1  ;;  %p523_p13 = scmp.lt.s32.totalorder %s517_s1, %s517_s1 }
  0x1f   :  { %p524_p0 = por %p523_p13, %p522_p12 }
  0x21   :  { %p525_p1 = pnand %p524_p0, %p518_p11 }
  0x23   :  { %528 = shalt.err (!%p525_p1)
}
  0x24   :  { %25 = dma.hbm_to_vmem [thread:$0]  %s746_s0, 128, %s23_s16, [#allocation3]  }
  0x25   :  { %s529_s30 = scalar_lea.hbm %s749_s3, 1024 }
  0x26   :  { %p530_p2 = scmp.ne.s32.totalorder %s749_s3, %s529_s30  ;;  %p533_p3 = scmp.lt.u32.totalorder %s529_s30, %s749_s3 }
  0x28   :  { %p535_p4 = pnand %p533_p3, %p530_p2 }
  0x2a   :  { %538 = shalt.err (!%p535_p4)
}
  0x2b   :  { %s539_s14 = scalar_lea.vmem %s46_s18, 1024  ;;  %p544_p6 = scmp.lt.s32.totalorder %s46_s18, %s46_s18 }
  0x2c   :  { %p540_p5 = scmp.ne.s32.totalorder %s46_s18, %s539_s14  ;;  %p545_p7 = scmp.lt.s32.totalorder %s539_s14, %s539_s14 }
  0x2e   :  { %p546_p8 = por %p545_p7, %p544_p6 }
  0x30   :  { %p547_p9 = pnand %p546_p8, %p540_p5 }
  0x32   :  { %550 = shalt.err (!%p547_p9)
}
  0x33   :  { %51 = dma.hbm_to_vmem [thread:$0]  %s749_s3, 1024, %s46_s18, [#allocation6], %s604_s11, %s604_s11, %s605_s12  }
  0x34   :  { %s608_s16 = smov [#allocation8]   ;;  %s551_s21 = scalar_lea.hbm %s751_s5, 1024 }
  0x35   :  { %s59_s17 = sshll.u32 %s608_s16, 4  ;;  %p552_p10 = scmp.ne.s32.totalorder %s751_s5, %s551_s21  ;;  %s60_s17 = int_to_ptr.vmem [resolvable:$true] %s59_s17 }
  0x36   :  { %p555_p11 = scmp.lt.u32.totalorder %s551_s21, %s751_s5 }
  0x38   :  { %p557_p12 = pnand %p555_p11, %p552_p10 }
  0x3a   :  { %560 = shalt.err (!%p557_p12)
}
  0x3b   :  { %s561_s1 = scalar_lea.vmem %s60_s17, 1024  ;;  %p566_p0 = scmp.lt.s32.totalorder %s60_s17, %s60_s17 }
  0x3c   :  { %p562_p13 = scmp.ne.s32.totalorder %s60_s17, %s561_s1  ;;  %p567_p1 = scmp.lt.s32.totalorder %s561_s1, %s561_s1 }
  0x3e   :  { %p568_p2 = por %p567_p1, %p566_p0 }
  0x40   :  { %p569_p3 = pnand %p568_p2, %p562_p13 }
  0x42   :  { %572 = shalt.err (!%p569_p3)
}
  0x43   :  { %65 = dma.hbm_to_vmem [thread:$0]  %s751_s5, 1024, %s60_s17, [#allocation9], %s604_s11, %s604_s11, %s605_s12  }
  0x44   :  { %595 = dma.done.wait [#allocation3], 128  }
  0x45   :  { %596 = vsyncadd [#allocation3], 4294967168 }
  0x46   :  { %597 = dma.done.wait [#allocation6], 1536  }
  0x47   :  { %598 = vsyncadd [#allocation6], 4294965760 }
  0x48   :  { %599 = dma.done.wait [#allocation9], 1024  }
  0x49   :  { %600 = vsyncadd [#allocation9], 4294966272  ;;  %v609_v0 = vmov 0.0|0.0   ;;  %vm610_vm0 = vmmov 0   ;;  %v611_v1 = vmov 0.0   ;;  %v81_v2 = vld [vmem:[#allocation5] sm:$0xff] }
  0x4a   :  { %441 = vmatprep.subr.bf16.mxu0 %v609_v0  ;;  %400 = vmatprep.mubr.msk.f32.mxu0 %vm610_vm0, %v611_v1  ;;  %v82_v3 = vld [vmem:[#allocation5 + $0x8] sm:$0xff]  ;;  %v83_v4 = vld [vmem:[#allocation5 + $0x10] sm:$0xff]  ;;  %v84_v6 = vld [vmem:[#allocation5 + $0x18] sm:$0xff]  ;;  %vm92_vm1 = vcmask 261120   ;;  %vm182_vm2 = vcmask 523264   ;;  %s612_s28 = smov [#allocation10]  }
  0x4b   :  { %447 = vmatprep.subr.bf16.mxu1 %v609_v0  ;;  %419 = vmatprep.mubr.msk.f32.mxu1 %vm610_vm0, %v611_v1  ;;  %v442_v5 = vpack.c.bf16 %v82_v3, %v81_v2  ;;  %v167_v7 = vld [vmem:[#allocation7] sm:$0xff]  ;;  %v168_v8 = vld [vmem:[#allocation7 + $0x8] sm:$0xff]  ;;  %v445_v9 = vpack.c.bf16 %v84_v6, %v83_v4  ;;  %v80_v11 = vld [vmem:[#allocation2] sm:$0xff]  ;;  %s352_s29 = sshll.u32 %s612_s28, 4  ;;  %s353_s29 = int_to_ptr.vmem [resolvable:$true] %s352_s29 }
  0x4c   :  { %v448_v10 = vpack.c.bf16 %v168_v8, %v167_v7  ;;  %v169_v12 = vld [vmem:[#allocation7 + $0x10] sm:$0xff]  ;;  %v170_v13 = vld [vmem:[#allocation7 + $0x18] sm:$0xff]  ;;  %v171_v15 = vld [vmem:[#allocation7 + $0x20] sm:$0xff]  ;;  %s573_s30 = scalar_lea.vmem %s353_s29, 128  ;;  %p578_p5 = scmp.lt.s32.totalorder %s353_s29, %s353_s29 }
  0x4d   :  { %443 = vmatpush3.bf16.msra.mxu0 %v442_v5  ;;  %v451_v14 = vpack.c.bf16 %v170_v13, %v169_v12  ;;  %v172_v16 = vld [vmem:[#allocation7 + $0x28] sm:$0xff]  ;;  %v173_v18 = vld [vmem:[#allocation7 + $0x30] sm:$0xff]  ;;  %v174_v19 = vld [vmem:[#allocation7 + $0x38] sm:$0xff]  ;;  %p574_p4 = scmp.ne.s32.totalorder %s353_s29, %s573_s30  ;;  %p579_p6 = scmp.lt.s32.totalorder %s573_s30, %s573_s30 }
  0x4e   :  { %444 = vmatprep.subr.bf16.mxu0 %v609_v0  ;;  %449 = vmatpush3.bf16.msra.mxu1 %v448_v10  ;;  %v454_v17 = vpack.c.bf16 %v172_v16, %v171_v15  ;;  %v457_v20 = vpack.c.bf16 %v174_v19, %v173_v18  ;;  %v257_v21 = vld [vmem:[#allocation8] sm:$0xff]  ;;  %v258_v22 = vld [vmem:[#allocation8 + $0x8] sm:$0xff]  ;;  %v363_v24 = vld [vmem:[%s748_s2] ss:$0 sm:$0xff] }
  0x4f   :  { %450 = vmatprep.subr.bf16.mxu1 %v609_v0  ;;  %v460_v23 = vpack.c.bf16 %v258_v22, %v257_v21  ;;  %v259_v29 = vld [vmem:[#allocation8 + $0x10] sm:$0xff]  ;;  %v260_v30 = vld [vmem:[#allocation8 + $0x18] sm:$0xff]  ;;  %v261_v32 = vld [vmem:[#allocation8 + $0x20] sm:$0xff]  ;;  %p580_p7 = por %p579_p6, %p578_p5 }
  0x50   :  { %v463_v31 = vpack.c.bf16 %v260_v30, %v259_v29  ;;  %v262_v33 = vld [vmem:[#allocation8 + $0x28] sm:$0xff]  ;;  %v263_v35 = vld [vmem:[#allocation8 + $0x30] sm:$0xff]  ;;  %v264_v36 = vld [vmem:[#allocation8 + $0x38] sm:$0xff] }
  0x51   :  { %446 = vmatpush3.bf16.msra.mxu0 %v445_v9  ;;  %v466_v34 = vpack.c.bf16 %v262_v33, %v261_v32  ;;  %v469_v37 = vpack.c.bf16 %v264_v36, %v263_v35  ;;  %v365_v38 = vld [vmem:[%s750_s4] ss:$0 sm:$0xff]  ;;  %p581_p8 = pnand %p580_p7, %p574_p4 }
  0x52   :  { %459 = vmatprep.subr.bf16.mxu0 %v609_v0  ;;  %452 = vmatpush3.bf16.msra.mxu1 %v451_v14  ;;  %v367_v43 = vld [vmem:[%s752_s6] ss:$0 sm:$0xff] }
  0x53   :  { %453 = vmatprep.subr.bf16.mxu1 %v609_v0 }
  0x54   :  { %401 = vmatmul.mubr.msk.f32.vlgmr.msra.gmra.mrb[0].mxu0 %vm92_vm1, %v80_v11 }
  0x55   :  { %438 = vmatprep.mubr.msk.f32.mxu0 %vm610_vm0, %v611_v1  ;;  %461 = vmatpush3.bf16.msra.mxu0 %v460_v23 }
  0x56   :  { %455 = vmatpush3.bf16.msra.mxu1 %v454_v17  ;;  %462 = vmatprep.subr.bf16.mxu0 %v609_v0 }
  0x57   :  { %456 = vmatprep.subr.bf16.mxu1 %v609_v0 }
  0x59   :  { %464 = vmatpush3.bf16.msra.mxu0 %v463_v31 }
  0x5a   :  { %458 = vmatpush3.bf16.msra.mxu1 %v457_v20  ;;  %465 = vmatprep.subr.bf16.mxu0 %v609_v0 }
  0x5d   :  { %467 = vmatpush3.bf16.msra.mxu0 %v466_v34 }
  0x5e   :  { %468 = vmatprep.subr.bf16.mxu0 %v609_v0 }
  0x61   :  { %470 = vmatpush3.bf16.msra.mxu0 %v469_v37 }
 0x127   :  { %v162_v25 = vpop.f32.mrb[0].mxu0 }
 0x128   :  { %v163_v26 = vadd.f32 %v363_v24, %v162_v25  ;;  %v402_v27 = vpop.f32.mrb[1].mxu0 }
 0x12a   :  { %481 = vtanh.f32 %v163_v26 }
 0x134   :  { %v482_v28 = vpop.eup %481 }
 0x135   :  { %420 = vmatmul.mubr.msk.f32.vlgmr.msra.gmra.mrb[0].mxu1 %vm182_vm2, %v482_v28 }
 0x208   :  { %v252_v39 = vpop.f32.mrb[0].mxu1 }
 0x209   :  { %v253_v40 = vadd.f32 %v365_v38, %v252_v39  ;;  %v421_v41 = vpop.f32.mrb[1].mxu1 }
 0x20b   :  { %483 = vtanh.f32 %v253_v40 }
 0x215   :  { %v484_v42 = vpop.eup %483 }
 0x216   :  { %439 = vmatmul.mubr.msk.f32.vlgmr.msra.gmra.mrb[2].mxu0 %vm182_vm2, %v484_v42 }
 0x2e9   :  { %v341_v44 = vpop.f32.mrb[2].mxu0 }
 0x2ea   :  { %v342_v45 = vadd.f32 %v367_v43, %v341_v44  ;;  %v440_v46 = vpop.f32.mrb[3].mxu0 }
 0x2ec   :  { %345 = vst [vmem:[#allocation10] sm:$0xff] %v342_v45 }
 0x2ed   :  { %584 = shalt.err (!%p581_p8)
}
 0x2ee   :  { %s585_s9 = scalar_lea.hbm %s753_s7, 128 }
 0x2ef   :  { %p586_p9 = scmp.ne.s32.totalorder %s753_s7, %s585_s9  ;;  %p589_p10 = scmp.lt.u32.totalorder %s585_s9, %s753_s7 }
 0x2f1   :  { %p591_p11 = pnand %p589_p10, %p586_p9 }
 0x2f3   :  { %594 = shalt.err (!%p591_p11)
}
 0x2f4   :  { %355 = dma.vmem_to_hbm [thread:$0]  %s353_s29, 128, %s753_s7, [#allocation4]  }
 0x2f5   :  { %601 = dma.done.wait [#allocation4], 128  }
 0x2f6   :  { %602 = vsyncadd [#allocation4], 4294967168 }
 0x2f7   :  { %359 = vsyncpa [#allocation3], 1 }
 0x2f8   :  { %360 = vsyncpa [#allocation6], 1 }
 0x2f9   :  { %361 = vsyncpa [#allocation9], 1 }
 0x2fa   :  { %362 = vsyncpa [#allocation4], 1 }

</bundles_post_ra>
